<compile_context>
chip_gen: v6e
topology: v6e:2x2x1
jax: 0.10.0
libtpu: 0.0.40
codegen_flags: <defaults>
</compile_context>

<pallas_src>
import math
import functools

import jax
import jax.numpy as jnp
from jax.experimental import pallas as pl
from jax.experimental.pallas import tpu as pltpu

MAX_SEQ_LEN = 64


# ----------------------------------------------------------------------------
# Kernel helpers
# ----------------------------------------------------------------------------
def _layer_norm(x, w, b, eps=1e-5):
    """x: (N, D) f32, w/b: (1, D) f32. Matches torch LayerNorm(eps=1e-5)."""
    mean = jnp.mean(x, axis=-1, keepdims=True)
    c = x - mean
    var = jnp.mean(c * c, axis=-1, keepdims=True)
    return c * jax.lax.rsqrt(var + eps) * w + b


# ----------------------------------------------------------------------------
# Pallas kernel: ONE TransformerEncoderLayer per grid step.
#   grid = (B, L);  b = parallel (independent sequences), l = arbitrary (carry)
# ----------------------------------------------------------------------------
def encoder_layer_kernel(
    x_ref,      # (S, D)    f32   embeddings for this batch element
    pe_ref,     # (S, D)    f32   sinusoidal positional encoding
    kb_ref,     # (1, S)    f32   additive key bias (0 valid / -1e9 pad)
    wqkv_ref,   # (3, D, D) bf16  pre-transposed; Q part pre-scaled by 1/sqrt(hd)
    wo_ref,     # (D, D)    bf16  output projection (pre-transposed)
    w1_ref,     # (D, Dff)  bf16  FFN linear1 (pre-transposed)
    w2_ref,     # (Dff, D)  bf16  FFN linear2 (pre-transposed)
    vec_ref,    # (16, D)   f32   packed biases + LayerNorm params (row-sliced)
    o_ref,      # (S, D)    f32   final output block for this batch element
    x_scr,      # (S, D)    f32   VMEM scratch: activation carried across layers
    *,
    nhead: int,
):
    l = pl.program_id(1)
    S, D = x_scr.shape
    Dff = w1_ref.shape[1]
    hd = D // nhead

    @pl.when(l == 0)
    def _():
        # fold positional-encoding add into the first layer step
        x_scr[...] = x_ref[...] + pe_ref[...]

    vec = vec_ref[...]                      # (16, D) f32: row-sliced params only
    x = x_scr[...]                          # (S, D) f32
    xb = x.astype(jnp.bfloat16)             # single bf16 cast reused for Q/K/V

    # ---- QKV projections: heads live on a leading axis, never lane-sliced ----
    wqkv = wqkv_ref[...]                    # (3, D, D) bf16
    q = jnp.dot(xb, wqkv[0], preferred_element_type=jnp.float32) + vec[0:1]
    k = jnp.dot(xb, wqkv[1], preferred_element_type=jnp.float32) + vec[1:2]
    v = jnp.dot(xb, wqkv[2], preferred_element_type=jnp.float32) + vec[2:3]

    qh = q.reshape(S, nhead, hd).transpose(1, 0, 2).astype(jnp.bfloat16)  # (H,S,hd)
    kh = k.reshape(S, nhead, hd).transpose(1, 0, 2).astype(jnp.bfloat16)
    vh = v.reshape(S, nhead, hd).transpose(1, 0, 2).astype(jnp.bfloat16)

    # ---- all heads in one batched contraction pair ----
    s = jnp.einsum('hqd,hkd->hqk', qh, kh,
                   preferred_element_type=jnp.float32)                    # (H,S,S)
    s = s + kb_ref[...]                     # (1,S) broadcasts over (H,S,S): one add/layer
    s = s - jnp.max(s, axis=-1, keepdims=True)
    p = jnp.exp(s)
    # approx reciprocal runs on the EUP slot; ~1e-3 rel. error vs exact softmax
    p = p * pl.reciprocal(jnp.sum(p, axis=-1, keepdims=True), approx=True)

    ctx = jnp.einsum('hqk,hkd->hqd', p.astype(jnp.bfloat16), vh,
                     preferred_element_type=jnp.float32)                  # (H,S,hd)
    ctx = ctx.transpose(1, 0, 2).reshape(S, D)

    # ---- single K=D output projection (no per-head matmuls / concat) ----
    attn = jnp.dot(ctx.astype(jnp.bfloat16), wo_ref[...],
                   preferred_element_type=jnp.float32) + vec[3:4]

    # ---- residual + LayerNorm 1 (post-norm) ----
    x1 = _layer_norm(x + attn, vec[6:7], vec[7:8])

    # ---- feed-forward (ReLU) ----
    ff = jnp.dot(x1.astype(jnp.bfloat16), w1_ref[...],
                 preferred_element_type=jnp.float32) + vec[4:5, :Dff]
    ff = jnp.maximum(ff, 0.0)
    ff = jnp.dot(ff.astype(jnp.bfloat16), w2_ref[...],
                 preferred_element_type=jnp.float32) + vec[5:6]

    # ---- residual + LayerNorm 2 ----
    x2 = _layer_norm(x1 + ff, vec[8:9], vec[9:10])
    x_scr[...] = x2

    @pl.when(l == pl.num_programs(1) - 1)
    def _():
        # TODO(synk): for a production D=32 model, pad D to 128 (or repack the
        # slab as (B*S*D/128, 128)) to make this store lane-dense.
        o_ref[...] = x2.astype(o_ref.dtype)


def transformer_encoder(x, padding_mask, stacked_params, pos_enc, nhead):
    """x: (B, S, D) f32 embeddings, padding_mask: (B, S) (1=valid, 0=pad)."""
    B, S, D = x.shape
    wqkv, wo, w1, w2, vec = stacked_params
    L = wqkv.shape[0]
    Dff = w1.shape[2]

    key_bias = jnp.where(padding_mask > 0.0, 0.0, -1e9).astype(jnp.float32)
    key_bias = key_bias.reshape(B, 1, S)
    pe = pos_enc[:S].astype(jnp.float32)                    # (S, D)

    # explicit VMEM budget: double-buffered per-layer weights + activations,
    # clamped well below v7x's 64 MiB physical VMEM.
    per_layer_w = 2 * (3 * D * D + D * D + 2 * D * Dff)     # bf16 bytes
    per_layer_v = 16 * max(D, Dff) * 4
    per_block_act = (6 * S * max(D, Dff) + 2 * nhead * S * S) * 4
    need = 2 * (per_layer_w + per_layer_v) + 4 * per_block_act + (2 << 20)
    vmem_limit = int(min(max(need, 16 * 1024 * 1024), 48 * 1024 * 1024))

    out = pl.pallas_call(
        functools.partial(encoder_layer_kernel, nhead=nhead),
        out_shape=jax.ShapeDtypeStruct((B, S, D), jnp.float32),
        grid_spec=pltpu.PrefetchScalarGridSpec(
            num_scalar_prefetch=0,
            grid=(B, L),                                     # b outer, l inner
            in_specs=[
                pl.BlockSpec((None, S, D), lambda b, l: (b, 0, 0)),      # x
                pl.BlockSpec((S, D), lambda b, l: (0, 0)),               # pos enc
                pl.BlockSpec((None, 1, S), lambda b, l: (b, 0, 0)),      # key bias
                pl.BlockSpec((None, 3, D, D), lambda b, l: (l, 0, 0, 0)),  # wqkv
                pl.BlockSpec((None, D, D), lambda b, l: (l, 0, 0)),      # wo
                pl.BlockSpec((None, D, Dff), lambda b, l: (l, 0, 0)),    # w1
                pl.BlockSpec((None, Dff, D), lambda b, l: (l, 0, 0)),    # w2
                pl.BlockSpec((None, 16, D), lambda b, l: (l, 0, 0)),     # vec pack
            ],
            out_specs=pl.BlockSpec((None, S, D), lambda b, l: (b, 0, 0)),
            scratch_shapes=[pltpu.VMEM((S, D), jnp.float32)],
        ),
        compiler_params=pltpu.CompilerParams(
            dimension_semantics=("parallel", "arbitrary"),
            vmem_limit_bytes=vmem_limit,
        ),
    )(x, pe, key_bias, wqkv, wo, w1, w2, vec)
    return out


# ----------------------------------------------------------------------------
# Parameter construction (deterministic, synthetic).
#   * weights pre-transposed (torch computes x @ W.T)
#   * Q weight/bias pre-scaled by 1/sqrt(hd)
#   * Q/K/V split on a leading axis (3, D, D) -> no lane slicing in-kernel
#   * wo kept as (D, D); all small vectors packed into (16, D) row tiles
#   * matmul weights stored in bf16 (intentional deviation from torch f32)
# ----------------------------------------------------------------------------
def make_positional_encoding(emb_size, maxlen=MAX_SEQ_LEN):
    den = jnp.exp(-jnp.arange(0, emb_size, 2, dtype=jnp.float32)
                  * math.log(10000.0) / emb_size)
    pos = jnp.arange(0, maxlen, dtype=jnp.float32).reshape(maxlen, 1)
    pe = jnp.zeros((maxlen, emb_size), jnp.float32)
    pe = pe.at[:, 0::2].set(jnp.sin(pos * den))
    pe = pe.at[:, 1::2].set(jnp.cos(pos * den))
    return pe  # (maxlen, emb_size)


def make_params(key, vocab_size, hidden_dim, num_layers, nhead):
    D = hidden_dim
    Dff = hidden_dim                       # dim_feedforward = hidden_dim in the module
    assert D % nhead == 0
    hd = D // nhead
    scale = 1.0 / math.sqrt(hd)

    keys = jax.random.split(key, 1 + num_layers * 6)

    # nn.Embedding(vocab_size + 1, D, padding_idx=0) -> row 0 zeroed
    emb = jax.random.normal(keys[0], (vocab_size + 1, D), jnp.float32)
    emb = emb.at[0].set(0.0)

    wqkv_l, wo_l, w1_l, w2_l, vec_l = [], [], [], [], []
    kidx = 1
    for _ in range(num_layers):
        s = 1.0 / math.sqrt(D)
        in_proj_w = jax.random.uniform(keys[kidx + 0], (3 * D, D), jnp.float32, -s, s)
        in_proj_b = jnp.zeros((3 * D,), jnp.float32)
        wo = jax.random.uniform(keys[kidx + 1], (D, D), jnp.float32, -s, s)
        bo = jnp.zeros((D,), jnp.float32)
        w1 = jax.random.uniform(keys[kidx + 2], (Dff, D), jnp.float32, -s, s)
        b1 = jax.random.uniform(keys[kidx + 3], (Dff,), jnp.float32, -s, s)
        w2 = jax.random.uniform(keys[kidx + 4], (D, Dff), jnp.float32, -s, s)
        b2 = jax.random.uniform(keys[kidx + 5], (D,), jnp.float32, -s, s)
        ln1w = jnp.ones((D,), jnp.float32)
        ln1b = jnp.zeros((D,), jnp.float32)
        ln2w = jnp.ones((D,), jnp.float32)
        ln2b = jnp.zeros((D,), jnp.float32)

        wq_t = in_proj_w[:D].T * scale                  # fold 1/sqrt(hd) into Q
        wk_t = in_proj_w[D:2 * D].T
        wv_t = in_proj_w[2 * D:].T
        wqkv_t = jnp.stack([wq_t, wk_t, wv_t])          # (3, D, D)
        bq = in_proj_b[:D] * scale
        bk = in_proj_b[D:2 * D]
        bv = in_proj_b[2 * D:]

        vec = jnp.zeros((16, D), jnp.float32)
        for r, val in enumerate([bq, bk, bv, bo, b1, b2, ln1w, ln1b, ln2w, ln2b]):
            vec = vec.at[r, :val.shape[0]].set(val)

        wqkv_l.append(wqkv_t)
        wo_l.append(wo.T)                                # (D, D)
        w1_l.append(w1.T)                                # (D, Dff)
        w2_l.append(w2.T)                                # (Dff, D)
        vec_l.append(vec)
        kidx += 6

    stacked = (
        jnp.stack(wqkv_l).astype(jnp.bfloat16),   # (L, 3, D, D)
        jnp.stack(wo_l).astype(jnp.bfloat16),     # (L, D, D)
        jnp.stack(w1_l).astype(jnp.bfloat16),     # (L, D, Dff)
        jnp.stack(w2_l).astype(jnp.bfloat16),     # (L, Dff, D)
        jnp.stack(vec_l),                         # (L, 16, D) f32
    )
    return {"embedding": emb, "layers": stacked, "pos_enc": make_positional_encoding(D)}


# ----------------------------------------------------------------------------
# Full forward = embedding lookup + fused (PE add + encoder stack) kernel
# ----------------------------------------------------------------------------
def transformer_forward(params, token_ids, coords, padding_mask, nhead=4):
    """token_ids: (B, S) int32; coords: unused (as in the PyTorch forward);
    padding_mask: (B, S) with 1=valid, 0=pad. Returns (B, S, D) f32."""
    del coords  # the PyTorch forward accepts coords but never uses it
    # TODO(synk): embedding gather stays in plain JAX (no clean tile pattern at this size)
    x = jnp.take(params["embedding"], token_ids, axis=0)          # (B, S, D)
    return transformer_encoder(x, padding_mask, params["layers"],
                               params["pos_enc"], nhead)


if __name__ == "__main__":
    B, S, D = 2, 8, 32
    VOCAB, NUM_LAYERS, NHEAD = 20, 2, 4

    key = jax.random.PRNGKey(0)
    k_tok, k_param, k_coord = jax.random.split(key, 3)

    padding_mask = jnp.ones((B, S), jnp.float32)
    padding_mask = padding_mask.at[1, 6:].set(0.0)            # last 2 tokens of seq 1 are padding

    token_ids = jax.random.randint(k_tok, (B, S), 1, VOCAB + 1).astype(jnp.int32)
    token_ids = token_ids * padding_mask.astype(jnp.int32)    # padded positions -> index 0

    coords = jax.random.normal(k_coord, (B, S, 3), jnp.float32)  # unused, mirrors torch signature

    params = make_params(k_param, VOCAB, D, NUM_LAYERS, NHEAD)

    fwd = jax.jit(functools.partial(transformer_forward, nhead=NHEAD))
    out = fwd(params, token_ids, coords, padding_mask)
    jax.block_until_ready(out)
    assert out.shape == (B, S, D)
    assert bool(jnp.all(jnp.isfinite(out)))
    print("KERNEL_OK")
</pallas_src>

<mosaic_0001>
module attributes {stable_mosaic.version = 11 : i64} {
  func.func @encoder_layer_kernel(%arg0: i32, %arg1: i32, %arg2: memref<1x8x32xf32, #tpu.memory_space<vmem>>, %arg3: memref<8x32xf32, #tpu.memory_space<vmem>>, %arg4: memref<1x1x8xf32, #tpu.memory_space<vmem>>, %arg5: memref<1x3x32x32xbf16, #tpu.memory_space<vmem>>, %arg6: memref<1x32x32xbf16, #tpu.memory_space<vmem>>, %arg7: memref<1x32x32xbf16, #tpu.memory_space<vmem>>, %arg8: memref<1x32x32xbf16, #tpu.memory_space<vmem>>, %arg9: memref<1x16x32xf32, #tpu.memory_space<vmem>>, %arg10: memref<1x8x32xf32, #tpu.memory_space<vmem>>, %arg11: memref<8x32xf32, #tpu.memory_space<vmem>>) attributes {dimension_semantics = [#tpu.dimension_semantics<parallel>, #tpu.dimension_semantics<arbitrary>], iteration_bounds = array<i64: 2, 2>, scalar_prefetch = 0 : i64, scratch_operands = 1 : i64, tpu.core_type = #tpu.core_type<tc>, window_params = [{transform_indices = @transform_0, window_bounds = array<i64: 1, 8, 32>}, {pipeline_mode = #tpu.pipeline_mode<synchronous>, transform_indices = @transform_1, window_bounds = array<i64: 8, 32>}, {transform_indices = @transform_2, window_bounds = array<i64: 1, 1, 8>}, {transform_indices = @transform_3, window_bounds = array<i64: 1, 3, 32, 32>}, {transform_indices = @transform_4, window_bounds = array<i64: 1, 32, 32>}, {transform_indices = @transform_5, window_bounds = array<i64: 1, 32, 32>}, {transform_indices = @transform_6, window_bounds = array<i64: 1, 32, 32>}, {transform_indices = @transform_7, window_bounds = array<i64: 1, 16, 32>}, {transform_indices = @transform_8, window_bounds = array<i64: 1, 8, 32>}]} {
    %c0_i32 = arith.constant 0 : i32
    %0 = arith.cmpi eq, %arg1, %c0_i32 : i32
    %1 = arith.extui %0 : i1 to i32
    %c0_i32_0 = arith.constant 0 : i32
    %2 = arith.cmpi ne, %1, %c0_i32_0 : i32
    scf.if %2 {
      %c0_44 = arith.constant 0 : index
      %c0_45 = arith.constant 0 : index
      %c0_46 = arith.constant 0 : index
      %129 = vector.load %arg2[%c0_44, %c0_45, %c0_46] : memref<1x8x32xf32, #tpu.memory_space<vmem>>, vector<1x8x32xf32>
      %130 = vector.shape_cast %129 : vector<1x8x32xf32> to vector<8x32xf32>
      %c0_47 = arith.constant 0 : index
      %c0_48 = arith.constant 0 : index
      %131 = vector.load %arg3[%c0_47, %c0_48] : memref<8x32xf32, #tpu.memory_space<vmem>>, vector<8x32xf32>
      %132 = arith.addf %130, %131 : vector<8x32xf32>
      %c0_49 = arith.constant 0 : index
      %c0_50 = arith.constant 0 : index
      %133 = vector.load %arg11[%c0_49, %c0_50] : memref<8x32xf32, #tpu.memory_space<vmem>>, vector<8x32xf32>
      tpu.vector_store %arg11[%c0_49, %c0_50], %132 {strides = array<i32>} : memref<8x32xf32, #tpu.memory_space<vmem>>, vector<8x32xf32>,
    } else {
    }
    %c0 = arith.constant 0 : index
    %c0_1 = arith.constant 0 : index
    %c0_2 = arith.constant 0 : index
    %3 = vector.load %arg9[%c0, %c0_1, %c0_2] : memref<1x16x32xf32, #tpu.memory_space<vmem>>, vector<1x16x32xf32>
    %4 = vector.shape_cast %3 : vector<1x16x32xf32> to vector<16x32xf32>
    %c0_3 = arith.constant 0 : index
    %c0_4 = arith.constant 0 : index
    %5 = vector.load %arg11[%c0_3, %c0_4] : memref<8x32xf32, #tpu.memory_space<vmem>>, vector<8x32xf32>
    %6 = arith.truncf %5 : vector<8x32xf32> to vector<8x32xbf16>
    %c0_5 = arith.constant 0 : index
    %c0_6 = arith.constant 0 : index
    %c0_7 = arith.constant 0 : index
    %c0_8 = arith.constant 0 : index
    %7 = vector.load %arg5[%c0_5, %c0_6, %c0_7, %c0_8] : memref<1x3x32x32xbf16, #tpu.memory_space<vmem>>, vector<1x3x32x32xbf16>
    %8 = vector.shape_cast %7 : vector<1x3x32x32xbf16> to vector<3x32x32xbf16>
    %9 = vector.extract_strided_slice %8 {offsets = [0, 0, 0], sizes = [1, 32, 32], strides = [1, 1, 1]} : vector<3x32x32xbf16> to vector<1x32x32xbf16>
    %10 = vector.shape_cast %9 : vector<1x32x32xbf16> to vector<32x32xbf16>
    %cst = arith.constant dense<0.000000e+00> : vector<8x32xf32>
    %11 = tpu.matmul %6, %10, %cst {dimension_numbers = #tpu.dot_dimension_numbers<[1], [0], [0], [1], [0, 0, 1, 1], [], []>} : vector<8x32xbf16>, vector<32x32xbf16>, vector<8x32xf32> -> vector<8x32xf32>
    %12 = vector.extract_strided_slice %4 {offsets = [0, 0], sizes = [1, 32], strides = [1, 1]} : vector<16x32xf32> to vector<1x32xf32>
    %13 = vector.broadcast %12 : vector<1x32xf32> to vector<8x32xf32>
    %14 = arith.addf %11, %13 : vector<8x32xf32>
    %15 = vector.extract_strided_slice %8 {offsets = [1, 0, 0], sizes = [1, 32, 32], strides = [1, 1, 1]} : vector<3x32x32xbf16> to vector<1x32x32xbf16>
    %16 = vector.shape_cast %15 : vector<1x32x32xbf16> to vector<32x32xbf16>
    %cst_9 = arith.constant dense<0.000000e+00> : vector<8x32xf32>
    %17 = tpu.matmul %6, %16, %cst_9 {dimension_numbers = #tpu.dot_dimension_numbers<[1], [0], [0], [1], [0, 0, 1, 1], [], []>} : vector<8x32xbf16>, vector<32x32xbf16>, vector<8x32xf32> -> vector<8x32xf32>
    %18 = vector.extract_strided_slice %4 {offsets = [1, 0], sizes = [1, 32], strides = [1, 1]} : vector<16x32xf32> to vector<1x32xf32>
    %19 = vector.broadcast %18 : vector<1x32xf32> to vector<8x32xf32>
    %20 = arith.addf %17, %19 : vector<8x32xf32>
    %21 = vector.extract_strided_slice %8 {offsets = [2, 0, 0], sizes = [1, 32, 32], strides = [1, 1, 1]} : vector<3x32x32xbf16> to vector<1x32x32xbf16>
    %22 = vector.shape_cast %21 : vector<1x32x32xbf16> to vector<32x32xbf16>
    %cst_10 = arith.constant dense<0.000000e+00> : vector<8x32xf32>
    %23 = tpu.matmul %6, %22, %cst_10 {dimension_numbers = #tpu.dot_dimension_numbers<[1], [0], [0], [1], [0, 0, 1, 1], [], []>} : vector<8x32xbf16>, vector<32x32xbf16>, vector<8x32xf32> -> vector<8x32xf32>
    %24 = vector.extract_strided_slice %4 {offsets = [2, 0], sizes = [1, 32], strides = [1, 1]} : vector<16x32xf32> to vector<1x32xf32>
    %25 = vector.broadcast %24 : vector<1x32xf32> to vector<8x32xf32>
    %26 = arith.addf %23, %25 : vector<8x32xf32>
    %27 = vector.shape_cast %14 : vector<8x32xf32> to vector<8x4x8xf32>
    %28 = tpu.transpose %27, [1, 0, 2] : vector<8x4x8xf32> -> vector<4x8x8xf32>
    %29 = arith.truncf %28 : vector<4x8x8xf32> to vector<4x8x8xbf16>
    %30 = vector.shape_cast %20 : vector<8x32xf32> to vector<8x4x8xf32>
    %31 = tpu.transpose %30, [1, 0, 2] : vector<8x4x8xf32> -> vector<4x8x8xf32>
    %32 = arith.truncf %31 : vector<4x8x8xf32> to vector<4x8x8xbf16>
    %33 = vector.shape_cast %26 : vector<8x32xf32> to vector<8x4x8xf32>
    %34 = tpu.transpose %33, [1, 0, 2] : vector<8x4x8xf32> -> vector<4x8x8xf32>
    %35 = arith.truncf %34 : vector<4x8x8xf32> to vector<4x8x8xbf16>
    "tpu.trace_start"() <{level = 10 : i32, message = "hqd,hkd->hqk"}> : () -> ()
    %cst_11 = arith.constant dense<0.000000e+00> : vector<4x8x8xf32>
    %36 = tpu.matmul %29, %32, %cst_11 {dimension_numbers = #tpu.dot_dimension_numbers<[2], [2], [1], [1], [0, 0, 0, 1, 1, 1], [0], [0]>} : vector<4x8x8xbf16>, vector<4x8x8xbf16>, vector<4x8x8xf32> -> vector<4x8x8xf32>
    "tpu.trace_stop"() : () -> ()
    %c0_12 = arith.constant 0 : index
    %c0_13 = arith.constant 0 : index
    %c0_14 = arith.constant 0 : index
    %37 = vector.load %arg4[%c0_12, %c0_13, %c0_14] : memref<1x1x8xf32, #tpu.memory_space<vmem>>, vector<1x1x8xf32>
    %38 = vector.shape_cast %37 : vector<1x1x8xf32> to vector<1x8xf32>
    %39 = vector.shape_cast %38 : vector<1x8xf32> to vector<1x1x8xf32>
    %40 = vector.broadcast %39 : vector<1x1x8xf32> to vector<4x8x8xf32>
    %41 = arith.addf %36, %40 : vector<4x8x8xf32>
    %cst_15 = arith.constant dense<0xFF800000> : vector<4x8xf32>
    %42 = vector.multi_reduction <maximumf>, %41, %cst_15 [2] : vector<4x8x8xf32> to vector<4x8xf32>
    %43 = vector.shape_cast %42 : vector<4x8xf32> to vector<4x8x1xf32>
    %44 = vector.broadcast %43 : vector<4x8x1xf32> to vector<4x8x8xf32>
    %45 = arith.subf %41, %44 : vector<4x8x8xf32>
    %46 = math.exp %45 : vector<4x8x8xf32>
    %cst_16 = arith.constant dense<0.000000e+00> : vector<4x8xf32>
    %47 = vector.multi_reduction <add>, %46, %cst_16 [2] : vector<4x8x8xf32> to vector<4x8xf32>
    %48 = vector.shape_cast %47 : vector<4x8xf32> to vector<4x8x1xf32>
    %49 = tpu.reciprocal %48 {approx = true} : vector<4x8x1xf32> -> vector<4x8x1xf32>
    %50 = vector.broadcast %49 : vector<4x8x1xf32> to vector<4x8x8xf32>
    %51 = arith.mulf %46, %50 : vector<4x8x8xf32>
    %52 = arith.truncf %51 : vector<4x8x8xf32> to vector<4x8x8xbf16>
    "tpu.trace_start"() <{level = 10 : i32, message = "hqk,hkd->hqd"}> : () -> ()
    %cst_17 = arith.constant dense<0.000000e+00> : vector<4x8x8xf32>
    %53 = tpu.matmul %52, %35, %cst_17 {dimension_numbers = #tpu.dot_dimension_numbers<[2], [1], [1], [2], [0, 0, 0, 1, 1, 2], [0], [0]>} : vector<4x8x8xbf16>, vector<4x8x8xbf16>, vector<4x8x8xf32> -> vector<4x8x8xf32>
    "tpu.trace_stop"() : () -> ()
    %54 = tpu.transpose %53, [1, 0, 2] : vector<4x8x8xf32> -> vector<8x4x8xf32>
    %55 = vector.shape_cast %54 : vector<8x4x8xf32> to vector<8x32xf32>
    %56 = arith.truncf %55 : vector<8x32xf32> to vector<8x32xbf16>
    %c0_18 = arith.constant 0 : index
    %c0_19 = arith.constant 0 : index
    %c0_20 = arith.constant 0 : index
    %57 = vector.load %arg6[%c0_18, %c0_19, %c0_20] : memref<1x32x32xbf16, #tpu.memory_space<vmem>>, vector<1x32x32xbf16>
    %58 = vector.shape_cast %57 : vector<1x32x32xbf16> to vector<32x32xbf16>
    %cst_21 = arith.constant dense<0.000000e+00> : vector<8x32xf32>
    %59 = tpu.matmul %56, %58, %cst_21 {dimension_numbers = #tpu.dot_dimension_numbers<[1], [0], [0], [1], [0, 0, 1, 1], [], []>} : vector<8x32xbf16>, vector<32x32xbf16>, vector<8x32xf32> -> vector<8x32xf32>
    %60 = vector.extract_strided_slice %4 {offsets = [3, 0], sizes = [1, 32], strides = [1, 1]} : vector<16x32xf32> to vector<1x32xf32>
    %61 = vector.broadcast %60 : vector<1x32xf32> to vector<8x32xf32>
    %62 = arith.addf %59, %61 : vector<8x32xf32>
    %63 = arith.addf %5, %62 : vector<8x32xf32>
    %64 = vector.extract_strided_slice %4 {offsets = [6, 0], sizes = [1, 32], strides = [1, 1]} : vector<16x32xf32> to vector<1x32xf32>
    %65 = vector.extract_strided_slice %4 {offsets = [7, 0], sizes = [1, 32], strides = [1, 1]} : vector<16x32xf32> to vector<1x32xf32>
    %cst_22 = arith.constant dense<0.000000e+00> : vector<8xf32>
    %66 = vector.multi_reduction <add>, %63, %cst_22 [1] : vector<8x32xf32> to vector<8xf32>
    %67 = vector.shape_cast %66 : vector<8xf32> to vector<8x1xf32>
    %cst_23 = arith.constant 3.200000e+01 : f32
    %68 = vector.broadcast %cst_23 : f32 to vector<8x1xf32>
    %69 = arith.divf %67, %68 : vector<8x1xf32>
    %70 = vector.broadcast %69 : vector<8x1xf32> to vector<8x32xf32>
    %71 = arith.subf %63, %70 : vector<8x32xf32>
    %72 = arith.mulf %71, %71 : vector<8x32xf32>
    %cst_24 = arith.constant dense<0.000000e+00> : vector<8xf32>
    %73 = vector.multi_reduction <add>, %72, %cst_24 [1] : vector<8x32xf32> to vector<8xf32>
    %74 = vector.shape_cast %73 : vector<8xf32> to vector<8x1xf32>
    %cst_25 = arith.constant 3.200000e+01 : f32
    %75 = vector.broadcast %cst_25 : f32 to vector<8x1xf32>
    %76 = arith.divf %74, %75 : vector<8x1xf32>
    %cst_26 = arith.constant 9.99999974E-6 : f32
    %77 = vector.broadcast %cst_26 : f32 to vector<8x1xf32>
    %78 = arith.addf %76, %77 : vector<8x1xf32>
    %79 = math.rsqrt %78 : vector<8x1xf32>
    %80 = vector.broadcast %79 : vector<8x1xf32> to vector<8x32xf32>
    %81 = arith.mulf %71, %80 : vector<8x32xf32>
    %82 = vector.broadcast %64 : vector<1x32xf32> to vector<8x32xf32>
    %83 = arith.mulf %81, %82 : vector<8x32xf32>
    %84 = vector.broadcast %65 : vector<1x32xf32> to vector<8x32xf32>
    %85 = arith.addf %83, %84 : vector<8x32xf32>
    %86 = arith.truncf %85 : vector<8x32xf32> to vector<8x32xbf16>
    %c0_27 = arith.constant 0 : index
    %c0_28 = arith.constant 0 : index
    %c0_29 = arith.constant 0 : index
    %87 = vector.load %arg7[%c0_27, %c0_28, %c0_29] : memref<1x32x32xbf16, #tpu.memory_space<vmem>>, vector<1x32x32xbf16>
    %88 = vector.shape_cast %87 : vector<1x32x32xbf16> to vector<32x32xbf16>
    %cst_30 = arith.constant dense<0.000000e+00> : vector<8x32xf32>
    %89 = tpu.matmul %86, %88, %cst_30 {dimension_numbers = #tpu.dot_dimension_numbers<[1], [0], [0], [1], [0, 0, 1, 1], [], []>} : vector<8x32xbf16>, vector<32x32xbf16>, vector<8x32xf32> -> vector<8x32xf32>
    %90 = vector.extract_strided_slice %4 {offsets = [4, 0], sizes = [1, 32], strides = [1, 1]} : vector<16x32xf32> to vector<1x32xf32>
    %91 = vector.broadcast %90 : vector<1x32xf32> to vector<8x32xf32>
    %92 = arith.addf %89, %91 : vector<8x32xf32>
    %cst_31 = arith.constant 0.000000e+00 : f32
    %93 = vector.broadcast %cst_31 : f32 to vector<8x32xf32>
    %94 = arith.maximumf %92, %93 : vector<8x32xf32>
    %95 = arith.truncf %94 : vector<8x32xf32> to vector<8x32xbf16>
    %c0_32 = arith.constant 0 : index
    %c0_33 = arith.constant 0 : index
    %c0_34 = arith.constant 0 : index
    %96 = vector.load %arg8[%c0_32, %c0_33, %c0_34] : memref<1x32x32xbf16, #tpu.memory_space<vmem>>, vector<1x32x32xbf16>
    %97 = vector.shape_cast %96 : vector<1x32x32xbf16> to vector<32x32xbf16>
    %cst_35 = arith.constant dense<0.000000e+00> : vector<8x32xf32>
    %98 = tpu.matmul %95, %97, %cst_35 {dimension_numbers = #tpu.dot_dimension_numbers<[1], [0], [0], [1], [0, 0, 1, 1], [], []>} : vector<8x32xbf16>, vector<32x32xbf16>, vector<8x32xf32> -> vector<8x32xf32>
    %99 = vector.extract_strided_slice %4 {offsets = [5, 0], sizes = [1, 32], strides = [1, 1]} : vector<16x32xf32> to vector<1x32xf32>
    %100 = vector.broadcast %99 : vector<1x32xf32> to vector<8x32xf32>
    %101 = arith.addf %98, %100 : vector<8x32xf32>
    %102 = arith.addf %85, %101 : vector<8x32xf32>
    %103 = vector.extract_strided_slice %4 {offsets = [8, 0], sizes = [1, 32], strides = [1, 1]} : vector<16x32xf32> to vector<1x32xf32>
    %104 = vector.extract_strided_slice %4 {offsets = [9, 0], sizes = [1, 32], strides = [1, 1]} : vector<16x32xf32> to vector<1x32xf32>
    %cst_36 = arith.constant dense<0.000000e+00> : vector<8xf32>
    %105 = vector.multi_reduction <add>, %102, %cst_36 [1] : vector<8x32xf32> to vector<8xf32>
    %106 = vector.shape_cast %105 : vector<8xf32> to vector<8x1xf32>
    %cst_37 = arith.constant 3.200000e+01 : f32
    %107 = vector.broadcast %cst_37 : f32 to vector<8x1xf32>
    %108 = arith.divf %106, %107 : vector<8x1xf32>
    %109 = vector.broadcast %108 : vector<8x1xf32> to vector<8x32xf32>
    %110 = arith.subf %102, %109 : vector<8x32xf32>
    %111 = arith.mulf %110, %110 : vector<8x32xf32>
    %cst_38 = arith.constant dense<0.000000e+00> : vector<8xf32>
    %112 = vector.multi_reduction <add>, %111, %cst_38 [1] : vector<8x32xf32> to vector<8xf32>
    %113 = vector.shape_cast %112 : vector<8xf32> to vector<8x1xf32>
    %cst_39 = arith.constant 3.200000e+01 : f32
    %114 = vector.broadcast %cst_39 : f32 to vector<8x1xf32>
    %115 = arith.divf %113, %114 : vector<8x1xf32>
    %cst_40 = arith.constant 9.99999974E-6 : f32
    %116 = vector.broadcast %cst_40 : f32 to vector<8x1xf32>
    %117 = arith.addf %115, %116 : vector<8x1xf32>
    %118 = math.rsqrt %117 : vector<8x1xf32>
    %119 = vector.broadcast %118 : vector<8x1xf32> to vector<8x32xf32>
    %120 = arith.mulf %110, %119 : vector<8x32xf32>
    %121 = vector.broadcast %103 : vector<1x32xf32> to vector<8x32xf32>
    %122 = arith.mulf %120, %121 : vector<8x32xf32>
    %123 = vector.broadcast %104 : vector<1x32xf32> to vector<8x32xf32>
    %124 = arith.addf %122, %123 : vector<8x32xf32>
    %c0_41 = arith.constant 0 : index
    %c0_42 = arith.constant 0 : index
    %125 = vector.load %arg11[%c0_41, %c0_42] : memref<8x32xf32, #tpu.memory_space<vmem>>, vector<8x32xf32>
    tpu.vector_store %arg11[%c0_41, %c0_42], %124 {strides = array<i32>} : memref<8x32xf32, #tpu.memory_space<vmem>>, vector<8x32xf32>,
    %c1_i32 = arith.constant 1 : i32
    %126 = arith.cmpi eq, %arg1, %c1_i32 : i32
    %127 = arith.extui %126 : i1 to i32
    %c0_i32_43 = arith.constant 0 : i32
    %128 = arith.cmpi ne, %127, %c0_i32_43 : i32
    scf.if %128 {
      %c0_44 = arith.constant 0 : index
      %c0_45 = arith.constant 0 : index
      %c0_46 = arith.constant 0 : index
      %129 = vector.load %arg10[%c0_44, %c0_45, %c0_46] : memref<1x8x32xf32, #tpu.memory_space<vmem>>, vector<1x8x32xf32>
      %130 = vector.shape_cast %129 : vector<1x8x32xf32> to vector<8x32xf32>
      %131 = vector.shape_cast %124 : vector<8x32xf32> to vector<1x8x32xf32>
      tpu.vector_store %arg10[%c0_44, %c0_45, %c0_46], %131 {strides = array<i32>} : memref<1x8x32xf32, #tpu.memory_space<vmem>>, vector<1x8x32xf32>,
    } else {
    }
    return
  }
  func.func @transform_0(%arg0: i32, %arg1: i32) -> (i32, i32, i32) {
    %c0_i32 = arith.constant 0 : i32
    %c0_i32_0 = arith.constant 0 : i32
    %c0_i32_1 = arith.constant 0 : i32
    return %arg0, %c0_i32, %c0_i32_0 : i32, i32, i32
  }
  func.func @transform_1(%arg0: i32, %arg1: i32) -> (i32, i32) {
    %c0_i32 = arith.constant 0 : i32
    %c0_i32_0 = arith.constant 0 : i32
    %c0_i32_1 = arith.constant 0 : i32
    return %c0_i32, %c0_i32_0 : i32, i32
  }
  func.func @transform_2(%arg0: i32, %arg1: i32) -> (i32, i32, i32) {
    %c0_i32 = arith.constant 0 : i32
    %c0_i32_0 = arith.constant 0 : i32
    %c0_i32_1 = arith.constant 0 : i32
    return %arg0, %c0_i32, %c0_i32_0 : i32, i32, i32
  }
  func.func @transform_3(%arg0: i32, %arg1: i32) -> (i32, i32, i32, i32) {
    %c0_i32 = arith.constant 0 : i32
    %c0_i32_0 = arith.constant 0 : i32
    %c0_i32_1 = arith.constant 0 : i32
    %c0_i32_2 = arith.constant 0 : i32
    return %arg1, %c0_i32, %c0_i32_0, %c0_i32_1 : i32, i32, i32, i32
  }
  func.func @transform_4(%arg0: i32, %arg1: i32) -> (i32, i32, i32) {
    %c0_i32 = arith.constant 0 : i32
    %c0_i32_0 = arith.constant 0 : i32
    %c0_i32_1 = arith.constant 0 : i32
    return %arg1, %c0_i32, %c0_i32_0 : i32, i32, i32
  }
  func.func @transform_5(%arg0: i32, %arg1: i32) -> (i32, i32, i32) {
    %c0_i32 = arith.constant 0 : i32
    %c0_i32_0 = arith.constant 0 : i32
    %c0_i32_1 = arith.constant 0 : i32
    return %arg1, %c0_i32, %c0_i32_0 : i32, i32, i32
  }
  func.func @transform_6(%arg0: i32, %arg1: i32) -> (i32, i32, i32) {
    %c0_i32 = arith.constant 0 : i32
    %c0_i32_0 = arith.constant 0 : i32
    %c0_i32_1 = arith.constant 0 : i32
    return %arg1, %c0_i32, %c0_i32_0 : i32, i32, i32
  }
  func.func @transform_7(%arg0: i32, %arg1: i32) -> (i32, i32, i32) {
    %c0_i32 = arith.constant 0 : i32
    %c0_i32_0 = arith.constant 0 : i32
    %c0_i32_1 = arith.constant 0 : i32
    return %arg1, %c0_i32, %c0_i32_0 : i32, i32, i32
  }
  func.func @transform_8(%arg0: i32, %arg1: i32) -> (i32, i32, i32) {
    %c0_i32 = arith.constant 0 : i32
    %c0_i32_0 = arith.constant 0 : i32
    %c0_i32_1 = arith.constant 0 : i32
    return %arg0, %c0_i32, %c0_i32_0 : i32, i32, i32
  }
}

</mosaic_0001>

<bundles_post_ra>
// kernel: transformer_forward.1
= control target key start
LH: loop header
LB: loop body
LE: loop exit
PB: predicated region body
PF: predicated region fallthrough
CT: control target
= control target key end

     0   :  { %s2910_s0 = inlined_call_operand.vmem [shape: f32[2,8,32], index: 0, kind: input, shape index: {}]   ;;  %s2911_s1 = inlined_call_operand.vmem [shape: f32[8,32], index: 1, kind: input, shape index: {}]   ;;  %s2912_s2 = inlined_call_operand.vmem [shape: f32[2,1,8], index: 2, kind: input, shape index: {}]   ;;  %s2913_s3 = inlined_call_operand.vmem [shape: bf16[2,3,32,32], index: 3, kind: input, shape index: {}]   ;;  %s2914_s4 = inlined_call_operand.vmem [shape: bf16[2,32,32], index: 4, kind: input, shape index: {}]   ;;  %s2915_s5 = inlined_call_operand.vmem [shape: bf16[2,32,32], index: 5, kind: input, shape index: {}]   ;;  %s2916_s6 = inlined_call_operand.vmem [shape: bf16[2,32,32], index: 6, kind: input, shape index: {}]   ;;  %s2917_s7 = inlined_call_operand.vmem [shape: f32[2,16,32], index: 7, kind: input, shape index: {}]   ;;  %s2918_s8 = inlined_call_operand.hbm [shape: f32[2,8,32], index: 8, kind: output, shape index: {}]  }
   0x1   :  { %2931 = sst [smem:[#allocation16_spill]] %s2918_s8 }
   0x2   :  { %13 = vsyncpa [#allocation4], 0 }
   0x3   :  { %15 = vsyncpa [#allocation4 + $0x1], 0  ;;  %s2509_s27 = smov 0   ;;  %s2511_s28 = smov 0  }
   0x4   :  { %s2513_s29 = smov 0   ;;  %s2515_s30 = smov 0  }
   0x5   :  { %s2517_s9 = smov 0   ;;  %s2519_s10 = smov 0  }
   0x6   :  { %s2521_s11 = smov 0   ;;  %s2523_s12 = smov 0  }
   0x7 LB: > { %2932 = sst [smem:[#allocation6_spill]] %s2423_s27  ;;  %s2054_s13 = sadd.s32 4294967295, %s2451_s12   ;;  %s2451_s12 = sphi %s2523_s12, %s21_s12   ;;  %s2447_s11 = sphi %s2521_s11, %s2955_s11   ;;  %s2443_s10 = sphi %s2519_s10, %s2954_s10   ;;  %s2439_s9 = sphi %s2517_s9, %s2953_s9   ;;  %s2435_s30 = sphi %s2515_s30, %s2952_s30   ;;  %s2431_s29 = sphi %s2513_s29, %s2951_s29   ;;  %s2427_s28 = sphi %s2511_s28, %s2957_s28   ;;  %s2423_s27 = sphi %s2509_s27, %s2956_s27  }
   0x8   : > { %2933 = sst [smem:[#allocation7_spill]] %s2431_s29  ;;  %s2055_s14 = sadd.s32 4294967294, %s2451_s12  }
   0x9   : > { %2934 = sst [smem:[#allocation8_spill]] %s2443_s10  ;;  %s30_s15 = sadd.s32 1, %s2443_s10 }
   0xa   : > { %2935 = sst [smem:[#allocation9_spill]] %s2447_s11  ;;  %p31_p0 = scmp.ge.s32.totalorder %s30_s15, 2 }
   0xb   : > { %2936 = sst [smem:[#allocation10_spill]] %s2451_s12  ;;  %s33_s16 = sadd.s32 1, %s2447_s11 }
   0xc   : > { %p253_p1 = scmp.ne.s32.totalorder %s2431_s29, %s2427_s28  ;;  %p254_p2 = scmp.eq.s32.totalorder %s2054_s13, 3 }
   0xd   : > { %s2959_s15 = smov (%p31_p0, %s30_s15), 0  ;;  %s2961_s16 = smov (!%p31_p0, %s33_s16), %s2447_s11 }
   0xe   : > { %2937 = sst [smem:[#allocation11_spill]] %s2959_s15  ;;  %p2558_p3 = por %p254_p2, %p253_p1 }
   0xf   : > { %p259_p4 = scmp.ne.s32.totalorder %s2427_s28, %s2423_s27  ;;  %p35_p5 = scmp.ge.s32.totalorder %s2961_s16, 2 }
  0x10   : > { %s2938_s17 = scalar_select %p2558_p3, 1, 0 }
  0x11   : > { %p260_p6 = scmp.eq.s32.totalorder %s2055_s14, 3  ;;  %p2058_p7 = scmp.ge.s32.totalorder %s2451_s12, 1 }
  0x12   : > { %2939 = sst [smem:[#allocation12_spill]] %s2938_s17  ;;  %p334_p8 = scmp.lt.s32.totalorder %s2451_s12, 5 }
  0x13   : > { %s2963_s16 = smov (%p35_p5, %s2961_s16), 0  ;;  %p2568_p9 = por %p260_p6, %p259_p4 }
  0x14   : > { %2940 = sst [smem:[#allocation13_spill]] %s2963_s16  ;;  %p335_p10 = pnand %p2058_p7, %p334_p8 }
  0x15   : > { %s2941_s18 = scalar_select %p2568_p9, 1, 0 }
  0x16   : > { %s240_s19 = ssub.s32 %s2447_s11, %s2963_s16  ;;  %s243_s20 = sadd.s32 1, %s2431_s29 }
  0x17   : > { %2942 = sst [smem:[#allocation14_spill]] %s2941_s18  ;;  %p241_p11 = scmp.eq.s32.totalorder %s240_s19, 0 }
  0x18   : > { %338 = sbr.rel (%p335_p10) target bundleno = 2528 (0x9e0), region = 52  ;;  %s2922_s22 = sand.u32 (!%p335_p10), 1, %s2427_s28  }
  0x19   : > { %s2576_s21 = scalar_select %p241_p11, %s2431_s29, %s243_s20  }
  0x1a   : > { %p395_p12 = scmp.lt.s32.totalorder (!%p335_p10), %s2439_s9, 1  ;;  %s2582_s23 = sshll.u32 (!%p335_p10), %s2922_s22, 3 }
  0x1b   : > { %2943 = sst [smem:[#allocation15_spill]] %s2576_s21  ;;  %p402_p13 = scmp.lt.s32.totalorder (!%p335_p10), %s2435_s30, 1 }
  0x1c   : > { %s394_s21 = scalar_lea.vmem (!%p335_p10), [#allocation3], %s2582_s23  ;;  %p2070_p0 = scmp.ne.s32.totalorder (!%p335_p10), %s2435_s30, 0 }
  0x1d   : > { %s2586_s24 = scalar_select %p395_p12, %s2439_s9, 1 }
  0x1e   : > { %s403_s25 = scalar_select %p402_p13, %s2435_s30, 1 }
  0x1f   : > { %s2060_s26 = sshll.u32 %s2586_s24, 3  ;;  %s401_s19 = scalar_lea.vmem %s2912_s2, %s2586_s24 }
  0x20   : > { %s398_s15 = scalar_lea.vmem %s2910_s0, %s2060_s26  ;;  %s2245_s11 = smul.u32 48, %s403_s25 }
  0x21   : > { %s2111_s10 = sshll.u32 %s403_s25, 4  ;;  %431 = sbr.rel (%p2070_p0) target bundleno = 43 (0x2b), region = 56 }
  0x22   : > { %s2600_s29 = scalar_lea.vmem %s2913_s3, %s2245_s11  ;;  %s2605_s12 = scalar_lea.vmem %s2914_s4, %s2111_s10 }
  0x23   : > { %s2610_s13 = scalar_lea.vmem %s2915_s5, %s2111_s10  ;;  %s2615_s26 = scalar_lea.vmem %s2916_s6, %s2111_s10 }
  0x24   : > { %s2620_s11 = scalar_lea.vmem %s2917_s7, %s2111_s10 }
  0x26   : > { %v432_v0 = vld [vmem:[%s398_s15] sm:$0xff]  ;;  %vm435_vm0 = vcmask 261120  }
  0x27   : > { %v433_v1 = vld [vmem:[%s2911_s1] sm:$0xff] }
  0x28   : > { %v434_v2 = vadd.f32 %v433_v1, %v432_v0 }
  0x2a   : > { %436 = vst.msk [vmem:[#allocation2] sm:$0xff] %vm435_vm0, %v434_v2 }
  0x2b PF: > { %v2327_v3 = vld [vmem:[%s2600_s29 + $0x18] sm:$0xff]   ;;  %v2453_v4 = vmov 0.0   ;;  %v2328_v5 = vld [vmem:[%s2600_s29 + $0x8] sm:$0xff]   ;;  %v2329_v6 = vld [vmem:[%s2600_s29 + $0x10] sm:$0xff]   ;;  %vm2454_vm1 = vmmov 0   ;;  %vm469_vm2 = vcmask 261120   ;;  %v453_v10 = vlaneseq }
  0x2c   : > { %2157 = vmatprep.subr.bf16.mxu1 %v2453_v4  ;;  %2149 = vmatprep.subr.bf16.mxu0 %v2453_v4  ;;  %v2330_v7 = vld [vmem:[%s2600_s29] sm:$0xff]   ;;  %v2331_v18 = vld [vmem:[%s2600_s29 + $0x28] sm:$0xff]   ;;  %s2455_s8 = smov 104   ;;  %s2456_s10 = smov 120   ;;  %v2458_v29 = vmov 1983009808  }
  0x2d   : > { %2158 = vmatpush3.bf16.msra.mxu1 %v2327_v3  ;;  %2161 = vmatprep.mubr.msk.bf16.mxu1 %vm2454_vm1, %v2453_v4  ;;  %v2651_v11 = vshrl.u32 %v453_v10, 7  ;;  %v2655_v13 = vld [vmem:[%s2620_s11] sm:$0xff]  ;;  %s2457_s15 = smov 112   ;;  %v638_v30 = vunpack.c.l.s4 %v2458_v29  ;;  %v2459_v31 = vmov 1934713408   ;;  %vm1082_vm3 = vcmask 64512  }
  0x2e   : > { %2150 = vmatpush3.bf16.msra.mxu0 %v2328_v5  ;;  %2159 = vmatprep.subr.bf16.mxu1 %v2453_v4  ;;  %v2332_v25 = vld [vmem:[%s2600_s29 + $0x20] sm:$0xff]   ;;  %v670_v32 = vunpack.c.l.s4 %v2459_v31  ;;  %vm1318_vm4 = vcmask 1043456   ;;  %s2461_s22 = smov 8   ;;  %s2462_s24 = smov 24   ;;  %vm1649_vm5 = vcmask 130048   ;;  %vm1651_vm6 = vcmask 195584  }
  0x2f   : > { %2151 = vmatprep.subr.bf16.mxu0 %v2453_v4  ;;  %2153 = vmatprep.mubr.msk.bf16.mxu0 %vm2454_vm1, %v2453_v4  ;;  %v515_v12 = vsub.s32 1, %v2651_v11  ;;  %v455_v14 = vsub.s32 0, %v2651_v11  ;;  %v639_v33 = vunpack.c.0.s8 %v638_v30  ;;  %p2106_p1 = scmp.ne.s32.totalorder %s2435_s30, 1 }
  0x30   : > { %v671_v36 = vunpack.c.0.s8 %v670_v32 }
  0x31   : > { %v2637_v8 = vld [vmem:[#allocation2] sm:$0xff]  ;;  %2160 = vmatpush3.bf16.msra.mxu1 %v2329_v6  ;;  %v516_v15 = vrot.slane %v2655_v13, %v515_v12  ;;  %v456_v16 = vrot.slane %v2655_v13, %v455_v14  ;;  %v2678_v37 = vsub.s32 %v639_v33, %v2651_v11 }
  0x32   : > { %v440_v9 = vpack.c.bf16 %v2637_v8, %v2637_v8  ;;  %2152 = vmatpush3.bf16.msra.mxu0 %v2330_v7  ;;  %2173 = vmatprep.subr.bf16.mxu1 %v2453_v4  ;;  %v2681_v44 = vsub.s32 %v671_v36, %v2651_v11 }
  0x33   : > { %2165 = vmatprep.subr.bf16.mxu0 %v2453_v4 }
  0x34   : > { %2162 = vmatmul.mubr.msk.bf16.vlgmr.msra.gmra.mxu1 %vm469_vm2, %v440_v9 }
  0x35   : > { %2154 = vmatmul.mubr.msk.bf16.vlgmr.msra.gmra.mxu0 %vm469_vm2, %v440_v9  ;;  %2175 = vmatprep.mubr.msk.bf16.mxu1 %vm2454_vm1, %v2453_v4 }
  0x36   : > { %2169 = vmatprep.mubr.msk.bf16.mxu0 %vm2454_vm1, %v2453_v4  ;;  %2166 = vmatpush3.bf16.msra.mxu0 %v2331_v18 }
  0x37   : > { %2167 = vmatprep.subr.bf16.mxu0 %v2453_v4 }
  0x3a   : > { %2168 = vmatpush3.bf16.msra.mxu0 %v2332_v25 }
  0x3b   : > { %2179 = vmatprep.subr.bf16.mxu0 %v2453_v4 }
  0x3d   : > { %2170 = vmatmul.mubr.msk.bf16.vlgmr.msra.gmra.mxu0 %vm469_vm2, %v440_v9 }
  0x3e   : > { %2181 = vmatprep.mubr.msk.bf16.mxu0 %vm2454_vm1, %v2453_v4 }
  0xf4   : > { %v563_v17 = vpop.f32.mrf.mxu1 }
  0xf5   : > { %v564_v19 = vadd.f32 %v563_v17, %v516_v15  ;;  %v507_v20 = vpop.f32.mrf.mxu0 }
  0xf6   : > { %v2163_v21 = vpop.f32.mrf.mxu1  ;;  %v508_v22 = vadd.f32 %v507_v20, %v456_v16 }
  0xf7   : > { %782 = vrot.lane.b32.xlu1 %v564_v19, %s2455_s8  ;;  %776 = vrot.lane.b32.xlu0 %v564_v19, %s2456_s10  ;;  %v2155_v23 = vpop.f32.mrf.mxu0 }
  0xf8   : > { %v566_v24 = vpop.f32.mrf.mxu1 }
  0xf9   : > { %v510_v26 = vpop.f32.mrf.mxu0 }
  0xfa   : > { %v2164_v27 = vpop.f32.mrf.mxu1 }
  0xfb   : > { %779 = vrot.lane.b32.xlu0 %v564_v19, %s2457_s15  ;;  %626 = vrot.lane.b32.xlu1 %v508_v22, %s2456_s10  ;;  %v2156_v28 = vpop.f32.mrf.mxu0 }
  0xff   : > { %629 = vrot.lane.b32.xlu0 %v508_v22, %s2457_s15  ;;  %632 = vrot.lane.b32.xlu1 %v508_v22, %s2455_s8 }
 0x169   : > { %v783_v34 = vpop.permute.xlu1 %782  ;;  %v777_v35 = vpop.permute.xlu0 %776 }
 0x16a   : > { %v801_v38 = vcombine.low %v777_v35, %v783_v34  ;;  %v802_v39 = vcombine.high %v777_v35, %v783_v34 }
 0x16c   : > { %v809_v45 = vrot.slane %v801_v38, %v2678_v37  ;;  %v816_v46 = vrot.slane %v802_v39, %v2678_v37 }
 0x16d   : > { %v780_v40 = vpop.permute.xlu0 %779  ;;  %v627_v41 = vpop.permute.xlu1 %626 }
 0x16e   : > { %v785_v42 = vcombine.low %v564_v19, %v780_v40  ;;  %v786_v43 = vcombine.high %v564_v19, %v780_v40 }
 0x170   : > { %v793_v47 = vrot.slane %v785_v42, %v2678_v37  ;;  %v800_v48 = vrot.slane %v786_v43, %v2678_v37 }
 0x171   : > { %v630_v49 = vpop.permute.xlu0 %629  ;;  %v633_v50 = vpop.permute.xlu1 %632 }
 0x172   : > { %v817_v51 = vcombine.low %v793_v47, %v809_v45  ;;  %v818_v52 = vcombine.high %v793_v47, %v809_v45  ;;  %v833_v53 = vcombine.low %v800_v48, %v816_v46  ;;  %v834_v54 = vcombine.high %v800_v48, %v816_v46 }
 0x173   : > { %v635_v55 = vcombine.low %v508_v22, %v630_v49  ;;  %v636_v56 = vcombine.high %v508_v22, %v630_v49  ;;  %v651_v57 = vcombine.low %v627_v41, %v633_v50  ;;  %v652_v58 = vcombine.high %v627_v41, %v633_v50 }
 0x174   : > { %v825_v59 = vrot.slane %v817_v51, %v2681_v44  ;;  %v832_v60 = vrot.slane %v818_v52, %v2681_v44  ;;  %v841_v61 = vrot.slane %v833_v53, %v2681_v44  ;;  %v848_v62 = vrot.slane %v834_v54, %v2681_v44 }
 0x175   : > { %v643_v63 = vrot.slane %v635_v55, %v2678_v37  ;;  %v650_v0 = vrot.slane %v636_v56, %v2678_v37  ;;  %v659_v1 = vrot.slane %v651_v57, %v2678_v37  ;;  %v666_v2 = vrot.slane %v652_v58, %v2678_v37 }
 0x176   : > { %v853_v3 = vcombine.low %v825_v59, %v832_v60  ;;  %v2082_v5 = vcombine.high %v825_v59, %v832_v60  ;;  %v869_v6 = vcombine.low %v841_v61, %v848_v62  ;;  %v2083_v7 = vcombine.high %v841_v61, %v848_v62 }
 0x177   : > { %v667_v9 = vcombine.low %v643_v63, %v659_v1  ;;  %v668_v10 = vcombine.high %v643_v63, %v659_v1  ;;  %v683_v15 = vcombine.low %v650_v0, %v666_v2  ;;  %v684_v16 = vcombine.high %v650_v0, %v666_v2 }
 0x178   : > { %v860_v17 = vrot.slane %v853_v3, %v2678_v37  ;;  %v868_v18 = vrot.slane %v2082_v5, %v2678_v37  ;;  %v876_v19 = vrot.slane %v869_v6, %v2678_v37  ;;  %v884_v20 = vrot.slane %v2083_v7, %v2678_v37 }
 0x179   : > { %v675_v21 = vrot.slane %v667_v9, %v2681_v44  ;;  %v682_v22 = vrot.slane %v668_v10, %v2681_v44  ;;  %v691_v23 = vrot.slane %v683_v15, %v2681_v44  ;;  %v698_v24 = vrot.slane %v684_v16, %v2681_v44  ;;  %v619_v9 = vpop.f32.mrf.mxu0 }
 0x17a   : > { %v885_v25 = vcombine.low %v860_v17, %v868_v18  ;;  %v901_v26 = vcombine.low %v876_v19, %v884_v20  ;;  %v886_v27 = vcombine.high %v860_v17, %v868_v18  ;;  %v902_v28 = vcombine.high %v876_v19, %v884_v20  ;;  %v2086_v17 = vld [vmem:[%s401_s19] ss:$0 sm:$0xff] }
 0x17b   : > { %v703_v29 = vcombine.low %v675_v21, %v682_v22  ;;  %v2080_v30 = vcombine.high %v675_v21, %v682_v22  ;;  %v719_v31 = vcombine.low %v691_v23, %v698_v24  ;;  %v2081_v32 = vcombine.high %v691_v23, %v698_v24  ;;  %v2171_v10 = vpop.f32.mrf.mxu0 }
 0x17c   : > { %v893_v33 = vrot.slane %v885_v25, %v2681_v44  ;;  %v909_v34 = vrot.slane %v901_v26, %v2681_v44  ;;  %v900_v42 = vrot.slane %v886_v27, %v2681_v44  ;;  %v916_v43 = vrot.slane %v902_v28, %v2681_v44 }
 0x17d   : > { %v710_v35 = vrot.slane %v703_v29, %v2678_v37  ;;  %v718_v36 = vrot.slane %v2080_v30, %v2678_v37  ;;  %v726_v38 = vrot.slane %v719_v31, %v2678_v37  ;;  %v734_v39 = vrot.slane %v2081_v32, %v2678_v37  ;;  %v622_v15 = vpop.f32.mrf.mxu0 }
 0x17e   : > { %v917_v40 = vcombine.low %v893_v33, %v909_v34  ;;  %v918_v41 = vcombine.high %v893_v33, %v909_v34  ;;  %v919_v53 = vcombine.low %v900_v42, %v916_v43  ;;  %v920_v54 = vcombine.high %v900_v42, %v916_v43 }
 0x17f   : > { %v735_v45 = vcombine.low %v710_v35, %v718_v36  ;;  %v751_v46 = vcombine.low %v726_v38, %v734_v39  ;;  %v736_v55 = vcombine.high %v710_v35, %v718_v36  ;;  %v752_v56 = vcombine.high %v726_v38, %v734_v39  ;;  %v2172_v16 = vpop.f32.mrf.mxu0 }
 0x180   : > { %v921_v47 = vpack.c.bf16 %v917_v40, %v917_v40  ;;  %v922_v48 = vpack.c.bf16 %v918_v41, %v918_v41  ;;  %v923_v59 = vpack.c.bf16 %v919_v53, %v919_v53  ;;  %v924_v60 = vpack.c.bf16 %v920_v54, %v920_v54 }
 0x181   : > { %v743_v49 = vrot.slane %v735_v45, %v2681_v44  ;;  %v759_v50 = vrot.slane %v751_v46, %v2681_v44  ;;  %v750_v63 = vrot.slane %v736_v55, %v2681_v44  ;;  %v766_v0 = vrot.slane %v752_v56, %v2681_v44 }
 0x182   : > { %v1087_v51 = vsel %vm1082_vm3, %v921_v47, 0  ;;  %v1133_v52 = vsel %vm1082_vm3, %v922_v48, 0  ;;  %v1179_v1 = vsel %vm1082_vm3, %v923_v59, 0  ;;  %v1225_v2 = vsel %vm1082_vm3, %v924_v60, 0 }
 0x183   : > { %2174 = vmatpush3.bf16.xpose.msra.mxu1 %v1087_v51  ;;  %2180 = vmatpush3.bf16.xpose.msra.mxu0 %v1133_v52  ;;  %v767_v57 = vcombine.low %v743_v49, %v759_v50  ;;  %v768_v58 = vcombine.high %v743_v49, %v759_v50  ;;  %v769_v3 = vcombine.low %v750_v63, %v766_v0  ;;  %v571_v35 = vsub.s32 2, %v2651_v11 }
 0x184   : > { %2185 = vmatprep.subr.bf16.mxu1 %v2453_v4  ;;  %2191 = vmatprep.subr.bf16.mxu0 %v2453_v4  ;;  %v770_v5 = vcombine.high %v750_v63, %v766_v0 }
 0x185   : > { %v771_v61 = vpack.c.bf16 %v767_v57, %v767_v57  ;;  %v772_v62 = vpack.c.bf16 %v768_v58, %v768_v58  ;;  %v773_v6 = vpack.c.bf16 %v769_v3, %v769_v3  ;;  %v572_v43 = vrot.slane %v2655_v13, %v571_v35 }
 0x186   : > { %v774_v7 = vpack.c.bf16 %v770_v5, %v770_v5 }
 0x187   : > { %v620_v46 = vadd.f32 %v619_v9, %v572_v43 }
 0x18a   : > { %2176 = vmatmul.mubr.msk.bf16.vlgmr.msra.gmra.mxu1 %vm1082_vm3, %v771_v61  ;;  %2182 = vmatmul.mubr.msk.bf16.vlgmr.msra.gmra.mxu0 %vm1082_vm3, %v772_v62 }
 0x18b   : > { %2186 = vmatpush3.bf16.xpose.msra.mxu1 %v1179_v1  ;;  %2192 = vmatpush3.bf16.xpose.msra.mxu0 %v1225_v2 }
 0x18c   : > { %2187 = vmatprep.mubr.msk.bf16.mxu1 %vm2454_vm1, %v2453_v4  ;;  %2193 = vmatprep.mubr.msk.bf16.mxu0 %vm2454_vm1, %v2453_v4 }
 0x18d   : > { %2197 = vmatprep.subr.bf16.mxu1 %v2453_v4  ;;  %2203 = vmatprep.subr.bf16.mxu0 %v2453_v4 }
 0x192   : > { %2188 = vmatmul.mubr.msk.bf16.vlgmr.msra.gmra.mxu1 %vm1082_vm3, %v773_v6  ;;  %2194 = vmatmul.mubr.msk.bf16.vlgmr.msra.gmra.mxu0 %vm1082_vm3, %v774_v7 }
 0x193   : > { %2199 = vmatprep.mubr.msk.bf16.mxu1 %vm2454_vm1, %v2453_v4  ;;  %2205 = vmatprep.mubr.msk.bf16.mxu0 %vm2454_vm1, %v2453_v4 }
 0x24a   : > { %v1123_v18 = vpop.f32.mrf.mxu1  ;;  %v1169_v19 = vpop.f32.mrf.mxu0 }
 0x24b   : > { %v1124_v20 = vadd.f32 %v2086_v17, %v1123_v18  ;;  %v1170_v21 = vadd.f32 %v2086_v17, %v1169_v19 }
 0x24c   : > { %v2177_v22 = vpop.f32.mrf.mxu1  ;;  %v2183_v23 = vpop.f32.mrf.mxu0 }
 0x24d   : > { %v1270_v24 = vsel %vm1082_vm3, %v1170_v21, -inf  ;;  %v1267_v25 = vsel %vm1082_vm3, %v1124_v20, -inf }
 0x24e   : > { %1271 = vmax.xlane.f32.xlu1 %v1270_v24  ;;  %v1172_v26 = vpop.f32.mrf.mxu0  ;;  %1268 = vmax.xlane.f32.xlu0 %v1267_v25  ;;  %v1126_v27 = vpop.f32.mrf.mxu1 }
 0x250   : > { %v2178_v28 = vpop.f32.mrf.mxu1  ;;  %v2184_v29 = vpop.f32.mrf.mxu0 }
 0x252   : > { %v1215_v30 = vpop.f32.mrf.mxu1  ;;  %v1261_v31 = vpop.f32.mrf.mxu0 }
 0x253   : > { %v1216_v32 = vadd.f32 %v2086_v17, %v1215_v30  ;;  %v1262_v36 = vadd.f32 %v2086_v17, %v1261_v31 }
 0x254   : > { %v2189_v33 = vpop.f32.mrf.mxu1  ;;  %v2195_v34 = vpop.f32.mrf.mxu0 }
 0x255   : > { %v1273_v38 = vsel %vm1082_vm3, %v1216_v32, -inf  ;;  %v1276_v45 = vsel %vm1082_vm3, %v1262_v36, -inf }
 0x256   : > { %v1264_v39 = vpop.f32.mrf.mxu0  ;;  %1274 = vmax.xlane.f32.xlu0 %v1273_v38  ;;  %v1218_v40 = vpop.f32.mrf.mxu1 }
 0x258   : > { %v2190_v41 = vpop.f32.mrf.mxu1  ;;  %v2196_v42 = vpop.f32.mrf.mxu0 }
 0x25a   : > { %1277 = vmax.xlane.f32.xlu0 %v1276_v45 }
 0x25f   : > { %926 = vrot.lane.b32.xlu1 %v620_v46, %s2456_s10 }
 0x2d7   : > { %v1272_v47 = vpop.xlane.xlu1 %1271  ;;  %v1269_v48 = vpop.xlane.xlu0 %1268 }
 0x2d8   : > { %v1280_v49 = vsub.f32 %v1170_v21, %v1272_v47  ;;  %v1279_v50 = vsub.f32 %v1124_v20, %v1269_v48 }
 0x2da   : > { %v1285_v51 = vmul.f32 1.442695, %v1280_v49  ;;  %v1283_v52 = vmul.f32 1.442695, %v1279_v50 }
 0x2db   : > { %v927_v3 = vpop.permute.xlu1 %926 }
 0x2dc   : > { %2339 = vpow2.f32 %v1285_v51 }
 0x2dd   : > { %2341 = vpow2.f32 %v1283_v52 }
 0x2df   : > { %v1275_v57 = vpop.xlane.xlu0 %1274 }
 0x2e0   : > { %v1281_v60 = vsub.f32 %v1216_v32, %v1275_v57 }
 0x2e2   : > { %v1287_v62 = vmul.f32 1.442695, %v1281_v60 }
 0x2e3   : > { %v1278_v58 = vpop.xlane.xlu0 %1277 }
 0x2e4   : > { %v1282_v59 = vsub.f32 %v1262_v36, %v1278_v58 }
 0x2e6   : > { %v1289_v61 = vmul.f32 1.442695, %v1282_v59 }
 0x2e8   : > { %2343 = vpow2.f32 %v1289_v61 }
 0x2e9   : > { %v2747_v53 = vpop.eup %2339  ;;  %2345 = vpow2.f32 %v1287_v62 }
 0x2ea   : > { %v2749_v54 = vpop.eup %2341  ;;  %v1294_v55 = vsel %vm1082_vm3, %v2747_v53, 0.0 }
 0x2eb   : > { %v1291_v56 = vsel %vm1082_vm3, %v2749_v54, 0.0  ;;  %1295 = vadd.xlane.f32.xlu0 %v1294_v55 }
 0x2ec   : > { %1292 = vadd.xlane.f32.xlu1 %v1291_v56 }
 0x2f5   : > { %v2757_v63 = vpop.eup %2343 }
 0x2f6   : > { %v2759_v0 = vpop.eup %2345  ;;  %v1300_v1 = vsel %vm1082_vm3, %v2757_v63, 0.0 }
 0x2f7   : > { %v1297_v2 = vsel %vm1082_vm3, %v2759_v0, 0.0 }
 0x2fd   : > { %932 = vrot.lane.b32.xlu1 %v620_v46, %s2455_s8 }
 0x301   : > { %929 = vrot.lane.b32.xlu0 %v620_v46, %s2457_s15 }
 0x320   : > { %1301 = vadd.xlane.f32.xlu0 %v1300_v1 }
 0x321   : > { %1298 = vadd.xlane.f32.xlu1 %v1297_v2 }
 0x374   : > { %v1296_v5 = vpop.xlane.xlu0 %1295 }
 0x375   : > { %v1293_v6 = vpop.xlane.xlu1 %1292  ;;  %2347 = vrcp.f32 %v1296_v5 }
 0x376   : > { %2349 = vrcp.f32 %v1293_v6 }
 0x378   : > { %v930_v7 = vpop.permute.xlu0 %929 }
 0x379   : > { %v933_v9 = vpop.permute.xlu1 %932  ;;  %v935_v10 = vcombine.low %v620_v46, %v930_v7  ;;  %v936_v15 = vcombine.high %v620_v46, %v930_v7 }
 0x37a   : > { %v951_v16 = vcombine.low %v927_v3, %v933_v9  ;;  %v952_v17 = vcombine.high %v927_v3, %v933_v9 }
 0x37b   : > { %v943_v18 = vrot.slane %v935_v10, %v2678_v37  ;;  %v950_v19 = vrot.slane %v936_v15, %v2678_v37 }
 0x37c   : > { %v959_v20 = vrot.slane %v951_v16, %v2678_v37  ;;  %v966_v21 = vrot.slane %v952_v17, %v2678_v37 }
 0x37e   : > { %v967_v22 = vcombine.low %v943_v18, %v959_v20  ;;  %v968_v23 = vcombine.high %v943_v18, %v959_v20  ;;  %v983_v24 = vcombine.low %v950_v19, %v966_v21  ;;  %v984_v25 = vcombine.high %v950_v19, %v966_v21 }
 0x380   : > { %v975_v26 = vrot.slane %v967_v22, %v2681_v44  ;;  %v982_v27 = vrot.slane %v968_v23, %v2681_v44  ;;  %v991_v28 = vrot.slane %v983_v24, %v2681_v44  ;;  %v998_v29 = vrot.slane %v984_v25, %v2681_v44 }
 0x382   : > { %v1003_v30 = vcombine.low %v975_v26, %v982_v27  ;;  %v2084_v31 = vcombine.high %v975_v26, %v982_v27  ;;  %v1019_v32 = vcombine.low %v991_v28, %v998_v29  ;;  %v2085_v33 = vcombine.high %v991_v28, %v998_v29  ;;  %v2348_v43 = vpop.eup %2347 }
 0x383   : > { %v2350_v49 = vpop.eup %2349  ;;  %v1308_v59 = vmul.f32 %v2348_v43, %v2747_v53 }
 0x384   : > { %v1010_v34 = vrot.slane %v1003_v30, %v2678_v37  ;;  %v1018_v35 = vrot.slane %v2084_v31, %v2678_v37  ;;  %v1026_v36 = vrot.slane %v1019_v32, %v2678_v37  ;;  %v1034_v38 = vrot.slane %v2085_v33, %v2678_v37 }
 0x385   : > { %v1307_v58 = vmul.f32 %v2350_v49, %v2749_v54  ;;  %v1312_v3 = vpack.c.bf16 %v1308_v59, %v1308_v59 }
 0x386   : > { %v1035_v39 = vcombine.low %v1010_v34, %v1018_v35  ;;  %v1051_v40 = vcombine.low %v1026_v36, %v1034_v38  ;;  %v1036_v41 = vcombine.high %v1010_v34, %v1018_v35  ;;  %v1052_v42 = vcombine.high %v1026_v36, %v1034_v38 }
 0x387   : > { %v1311_v2 = vpack.c.bf16 %v1307_v58, %v1307_v58 }
 0x388   : > { %v1043_v45 = vrot.slane %v1035_v39, %v2681_v44  ;;  %v1059_v46 = vrot.slane %v1051_v40, %v2681_v44  ;;  %v1050_v47 = vrot.slane %v1036_v41, %v2681_v44  ;;  %v1066_v48 = vrot.slane %v1052_v42, %v2681_v44 }
 0x38a   : > { %v1067_v50 = vcombine.low %v1043_v45, %v1059_v46  ;;  %v1068_v51 = vcombine.high %v1043_v45, %v1059_v46  ;;  %v1069_v52 = vcombine.low %v1050_v47, %v1066_v48  ;;  %v1070_v55 = vcombine.high %v1050_v47, %v1066_v48  ;;  %v2333_v45 = vld [vmem:[%s2605_s12 + $0x8] sm:$0xff]  }
 0x38c   : > { %v1071_v56 = vpack.c.bf16 %v1067_v50, %v1067_v50  ;;  %v1072_v57 = vpack.c.bf16 %v1068_v51, %v1068_v51  ;;  %v1073_v62 = vpack.c.bf16 %v1069_v52, %v1069_v52  ;;  %v1074_v1 = vpack.c.bf16 %v1070_v55, %v1070_v55 }
 0x38e   : > { %v1320_v60 = vsel %vm1318_vm4, %v1071_v56, 0  ;;  %v1366_v61 = vsel %vm1318_vm4, %v1072_v57, 0  ;;  %v1412_v53 = vsel %vm1318_vm4, %v1073_v62, 0  ;;  %v1458_v54 = vsel %vm1318_vm4, %v1074_v1, 0  ;;  %v2334_v57 = vld [vmem:[%s2605_s12] sm:$0xff]   ;;  %s2460_s12 = smov 16  }
 0x38f   : > { %2198 = vmatpush3.bf16.msra.mxu1 %v1320_v60  ;;  %2204 = vmatpush3.bf16.msra.mxu0 %v1366_v61 }
 0x390   : > { %2209 = vmatprep.subr.bf16.mxu1 %v2453_v4  ;;  %2215 = vmatprep.subr.bf16.mxu0 %v2453_v4 }
 0x392   : > { %2200 = vmatmul.mubr.msk.bf16.vlgmr.msra.gmra.mxu1 %vm1082_vm3, %v1311_v2  ;;  %2206 = vmatmul.mubr.msk.bf16.vlgmr.msra.gmra.mxu0 %vm1082_vm3, %v1312_v3 }
 0x393   : > { %2210 = vmatpush3.bf16.msra.mxu1 %v1412_v53  ;;  %2216 = vmatpush3.bf16.msra.mxu0 %v1458_v54 }
 0x394   : > { %2211 = vmatprep.mubr.msk.bf16.mxu1 %vm2454_vm1, %v2453_v4  ;;  %2217 = vmatprep.mubr.msk.bf16.mxu0 %vm2454_vm1, %v2453_v4 }
 0x395   : > { %2221 = vmatprep.subr.bf16.mxu1 %v2453_v4  ;;  %2229 = vmatprep.subr.bf16.mxu0 %v2453_v4 }
 0x3a9   : > { %v1302_v5 = vpop.xlane.xlu0 %1301 }
 0x3aa   : > { %v1299_v6 = vpop.xlane.xlu1 %1298  ;;  %2351 = vrcp.f32 %v1302_v5 }
 0x3ab   : > { %2353 = vrcp.f32 %v1299_v6 }
 0x3b7   : > { %v2352_v7 = vpop.eup %2351 }
 0x3b8   : > { %v2354_v9 = vpop.eup %2353  ;;  %v1310_v10 = vmul.f32 %v2352_v7, %v2757_v63 }
 0x3b9   : > { %v1309_v15 = vmul.f32 %v2354_v9, %v2759_v0 }
 0x3ba   : > { %v1314_v16 = vpack.c.bf16 %v1310_v10, %v1310_v10 }
 0x3bb   : > { %v1313_v17 = vpack.c.bf16 %v1309_v15, %v1309_v15 }
 0x3bc   : > { %2218 = vmatmul.mubr.msk.bf16.vlgmr.msra.gmra.mxu0 %vm1082_vm3, %v1314_v16 }
 0x3bd   : > { %2212 = vmatmul.mubr.msk.bf16.vlgmr.msra.gmra.mxu1 %vm1082_vm3, %v1313_v17  ;;  %2233 = vmatprep.mubr.msk.bf16.mxu0 %vm2454_vm1, %v2453_v4 }
 0x3be   : > { %2225 = vmatprep.mubr.msk.bf16.mxu1 %vm2454_vm1, %v2453_v4  ;;  %2222 = vmatpush3.bf16.msra.mxu1 %v2333_v45 }
 0x3bf   : > { %2223 = vmatprep.subr.bf16.mxu1 %v2453_v4 }
 0x3c2   : > { %2224 = vmatpush3.bf16.msra.mxu1 %v2334_v57 }
 0x3c3   : > { %2237 = vmatprep.subr.bf16.mxu1 %v2453_v4 }
 0x452   : > { %v1356_v18 = vpop.f32.mrf.mxu1  ;;  %v1402_v19 = vpop.f32.mrf.mxu0 }
 0x454   : > { %v2201_v20 = vpop.f32.mrf.mxu1  ;;  %v2207_v21 = vpop.f32.mrf.mxu0 }
 0x455   : > { %v1660_v21 = vsub.s32 3, %v2651_v11 }
 0x456   : > { %v1359_v22 = vpop.f32.mrf.mxu1  ;;  %v1405_v63 = vpop.f32.mrf.mxu0 }
 0x457   : > { %v1661_v22 = vrot.slane %v2655_v13, %v1660_v21 }
 0x458   : > { %v2202_v23 = vpop.f32.mrf.mxu1  ;;  %v2208_v0 = vpop.f32.mrf.mxu0 }
 0x47c   : > { %v1494_v24 = vpop.f32.mrf.mxu0 }
 0x47d   : > { %v1448_v25 = vpop.f32.mrf.mxu1  ;;  %v1516_v26 = vcombine.low %v1402_v19, %v1494_v24  ;;  %v1517_v27 = vcombine.high %v1402_v19, %v1494_v24 }
 0x47e   : > { %v1500_v28 = vcombine.low %v1356_v18, %v1448_v25  ;;  %v1501_v29 = vcombine.high %v1356_v18, %v1448_v25  ;;  %v2219_v30 = vpop.f32.mrf.mxu0 }
 0x47f   : > { %v1524_v31 = vrot.slane %v1516_v26, %v2678_v37  ;;  %v1531_v32 = vrot.slane %v1517_v27, %v2678_v37  ;;  %v2213_v33 = vpop.f32.mrf.mxu1 }
 0x480   : > { %v1508_v34 = vrot.slane %v1500_v28, %v2678_v37  ;;  %v1515_v35 = vrot.slane %v1501_v29, %v2678_v37  ;;  %v1497_v36 = vpop.f32.mrf.mxu0  ;;  %v2335_v33 = vld [vmem:[%s2610_s13 + $0x8] sm:$0xff]  }
 0x481   : > { %v1451_v38 = vpop.f32.mrf.mxu1  ;;  %2230 = vmatpush3.bf16.msra.mxu0 %v2335_v33 }
 0x482   : > { %v1532_v39 = vcombine.low %v1508_v34, %v1524_v31  ;;  %v1533_v40 = vcombine.high %v1508_v34, %v1524_v31  ;;  %v1548_v41 = vcombine.low %v1515_v35, %v1531_v32  ;;  %v1549_v42 = vcombine.high %v1515_v35, %v1531_v32  ;;  %v2220_v43 = vpop.f32.mrf.mxu0  ;;  %v2336_v34 = vld [vmem:[%s2610_s13] sm:$0xff]   ;;  %2231 = vmatprep.subr.bf16.mxu0 %v2453_v4 }
 0x483   : > { %v2214_v46 = vpop.f32.mrf.mxu1  ;;  %v1734_v38 = vsub.s32 6, %v2651_v11 }
 0x484   : > { %v1540_v47 = vrot.slane %v1532_v39, %v2681_v44  ;;  %v1547_v48 = vrot.slane %v1533_v40, %v2681_v44  ;;  %v1556_v49 = vrot.slane %v1548_v41, %v2681_v44  ;;  %v1563_v50 = vrot.slane %v1549_v42, %v2681_v44 }
 0x485   : > { %2232 = vmatpush3.bf16.msra.mxu0 %v2336_v34  ;;  %v1739_v39 = vsub.s32 7, %v2651_v11  ;;  %v1735_v40 = vrot.slane %v2655_v13, %v1734_v38 }
 0x486   : > { %v1568_v51 = vcombine.low %v1540_v47, %v1547_v48  ;;  %v2095_v52 = vcombine.high %v1540_v47, %v1547_v48  ;;  %v1584_v55 = vcombine.low %v1556_v49, %v1563_v50  ;;  %v2096_v56 = vcombine.high %v1556_v49, %v1563_v50  ;;  %v2337_v48 = vld [vmem:[%s2615_s26 + $0x8] sm:$0xff]   ;;  %v2338_v49 = vld [vmem:[%s2615_s26] sm:$0xff]  }
 0x487   : > { %v1740_v43 = vrot.slane %v2655_v13, %v1739_v39  ;;  %v1749_v50 = vsub.s32 4, %v2651_v11 }
 0x488   : > { %v1575_v58 = vrot.slane %v1568_v51, %v2678_v37  ;;  %v1583_v59 = vrot.slane %v2095_v52, %v2678_v37  ;;  %v1591_v60 = vrot.slane %v1584_v55, %v2678_v37  ;;  %v1599_v61 = vrot.slane %v2096_v56, %v2678_v37 }
 0x489   : > { %v1750_v51 = vrot.slane %v2655_v13, %v1749_v50 }
 0x48a   : > { %v1601_v62 = vcombine.high %v1575_v58, %v1583_v59  ;;  %v1617_v1 = vcombine.high %v1591_v60, %v1599_v61  ;;  %v1600_v2 = vcombine.low %v1575_v58, %v1583_v59  ;;  %v1616_v3 = vcombine.low %v1591_v60, %v1599_v61 }
 0x48b   : > { %v1814_v61 = vsub.s32 5, %v2651_v11 }
 0x48c   : > { %v1615_v53 = vrot.slane %v1601_v62, %v2681_v44  ;;  %v1631_v54 = vrot.slane %v1617_v1, %v2681_v44  ;;  %v1608_v5 = vrot.slane %v1600_v2, %v2681_v44  ;;  %v1624_v6 = vrot.slane %v1616_v3, %v2681_v44 }
 0x48d   : > { %v1815_v62 = vrot.slane %v2655_v13, %v1814_v61 }
 0x48e   : > { %v1634_v7 = vcombine.low %v1615_v53, %v1631_v54  ;;  %v1633_v9 = vcombine.high %v1608_v5, %v1624_v6  ;;  %v1632_v10 = vcombine.low %v1608_v5, %v1624_v6  ;;  %v1635_v37 = vcombine.high %v1615_v53, %v1631_v54 }
 0x490   : > { %1641 = vrot.lane.b32.xlu1 %v1634_v7, %s2460_s12  ;;  %1637 = vrot.lane.b32.xlu0 %v1633_v9, %s2461_s22 }
 0x494   : > { %1645 = vrot.lane.b32.xlu1 %v1635_v37, %s2462_s24 }
 0x502   : > { %v1642_v15 = vpop.permute.xlu1 %1641  ;;  %v1638_v16 = vpop.permute.xlu0 %1637 }
 0x503   : > { %v1648_v17 = vsel %vm1082_vm3, %v1632_v10, %v1638_v16 }
 0x504   : > { %v1650_v19 = vsel %vm1649_vm5, %v1648_v17, %v1642_v15  ;;  %v438_v17 = vld [vmem:[%s2620_s11 + $0x8] sm:$0xff] }
 0x506   : > { %v1646_v18 = vpop.permute.xlu1 %1645 }
 0x507   : > { %v1652_v20 = vsel %vm1651_vm6, %v1650_v19, %v1646_v18  ;;  %v1888_v18 = vrot.slane %v438_v17, %v455_v14 }
 0x508   : > { %v1653_v44 = vpack.c.bf16 %v1652_v20, %v1652_v20  ;;  %v1893_v20 = vrot.slane %v438_v17, %v515_v12 }
 0x50a   : > { %2226 = vmatmul.mubr.msk.bf16.vlgmr.msra.gmra.mxu1 %vm469_vm2, %v1653_v44 }
 0x50b   : > { %2241 = vmatprep.mubr.msk.bf16.mxu1 %vm2454_vm1, %v2453_v4  ;;  %2238 = vmatpush3.bf16.msra.mxu1 %v2337_v48 }
 0x50c   : > { %2239 = vmatprep.subr.bf16.mxu1 %v2453_v4 }
 0x50f   : > { %2240 = vmatpush3.bf16.msra.mxu1 %v2338_v49 }
 0x5ca   : > { %v1711_v63 = vpop.f32.mrf.mxu1 }
 0x5cb   : > { %v1712_v23 = vadd.f32 %v1711_v63, %v1661_v22 }
 0x5cc   : > { %v2227_v0 = vpop.f32.mrf.mxu1 }
 0x5cd   : > { %v1717_v24 = vadd.f32 %v1712_v23, %v2637_v8 }
 0x5ce   : > { %v1714_v25 = vpop.f32.mrf.mxu1 }
 0x5cf   : > { %v1718_v26 = vsel %vm469_vm2, %v1717_v24, 0.0 }
 0x5d0   : > { %1719 = vadd.xlane.f32.xlu0 %v1718_v26  ;;  %v2228_v27 = vpop.f32.mrf.mxu1 }
 0x659   : > { %v1720_v28 = vpop.xlane.xlu0 %1719 }
 0x65a   : > { %v1722_v29 = vmul.f32 0.03125, %v1720_v28 }
 0x65c   : > { %v1723_v30 = vsub.f32 %v1717_v24, %v1722_v29 }
 0x65e   : > { %v1724_v31 = vmul.f32 %v1723_v30, %v1723_v30 }
 0x660   : > { %v1725_v32 = vsel %vm469_vm2, %v1724_v31, 0.0 }
 0x661   : > { %1726 = vadd.xlane.f32.xlu1 %v1725_v32 }
 0x6ea   : > { %v1727_v8 = vpop.xlane.xlu1 %1726 }
 0x6eb   : > { %v1728_v35 = vmul.f32 0.03125, %v1727_v8 }
 0x6ed   : > { %v1729_v36 = vadd.f32 1e-05, %v1728_v35 }
 0x6ef   : > { %2355 = vrsqrt.f32 %v1729_v36 }
 0x6fc   : > { %v2356_v41 = vpop.eup %2355 }
 0x6fd   : > { %v1731_v42 = vmul.f32 %v2356_v41, %v1723_v30 }
 0x6ff   : > { %v1736_v45 = vmul.f32 %v1735_v40, %v1731_v42 }
 0x701   : > { %v1741_v46 = vadd.f32 %v1740_v43, %v1736_v45 }
 0x703   : > { %v1742_v47 = vpack.c.bf16 %v1741_v46, %v1741_v46 }
 0x705   : > { %2234 = vmatmul.mubr.msk.bf16.vlgmr.msra.gmra.mxu0 %vm469_vm2, %v1742_v47 }
 0x7c5   : > { %v1800_v52 = vpop.f32.mrf.mxu0 }
 0x7c6   : > { %v1801_v55 = vadd.f32 %v1800_v52, %v1750_v51 }
 0x7c7   : > { %v2235_v56 = vpop.f32.mrf.mxu0 }
 0x7c8   : > { %v1806_v57 = vmax.f32 %v1801_v55, 0.0 }
 0x7c9   : > { %v1803_v58 = vpop.f32.mrf.mxu0 }
 0x7ca   : > { %v1807_v59 = vpack.c.bf16 %v1806_v57, %v1806_v57 }
 0x7cb   : > { %v2236_v60 = vpop.f32.mrf.mxu0 }
 0x7cc   : > { %2242 = vmatmul.mubr.msk.bf16.vlgmr.msra.gmra.mxu1 %vm469_vm2, %v1807_v59 }
 0x88c   : > { %v1865_v4 = vpop.f32.mrf.mxu1 }
 0x88d   : > { %v1866_v1 = vadd.f32 %v1865_v4, %v1815_v62 }
 0x88e   : > { %v2243_v2 = vpop.f32.mrf.mxu1 }
 0x88f   : > { %v1871_v3 = vadd.f32 %v1866_v1, %v1741_v46 }
 0x890   : > { %v1868_v53 = vpop.f32.mrf.mxu1 }
 0x891   : > { %v1872_v54 = vsel %vm469_vm2, %v1871_v3, 0.0 }
 0x892   : > { %1873 = vadd.xlane.f32.xlu0 %v1872_v54  ;;  %v2244_v5 = vpop.f32.mrf.mxu1 }
 0x91b   : > { %v1874_v6 = vpop.xlane.xlu0 %1873 }
 0x91c   : > { %v1875_v7 = vmul.f32 0.03125, %v1874_v6 }
 0x91e   : > { %v1876_v9 = vsub.f32 %v1871_v3, %v1875_v7 }
 0x920   : > { %v1877_v10 = vmul.f32 %v1876_v9, %v1876_v9 }
 0x922   : > { %v1878_v37 = vsel %vm469_vm2, %v1877_v10, 0.0 }
 0x923   : > { %1879 = vadd.xlane.f32.xlu0 %v1878_v37 }
 0x9ac   : > { %v1880_v15 = vpop.xlane.xlu0 %1879 }
 0x9ad   : > { %v1881_v16 = vmul.f32 0.03125, %v1880_v15 }
 0x9af   : > { %v1882_v13 = vadd.f32 1e-05, %v1881_v16 }
 0x9b1   : > { %2357 = vrsqrt.f32 %v1882_v13 }
 0x9be   : > { %v2358_v19 = vpop.eup %2357 }
 0x9bf   : > { %v1884_v44 = vmul.f32 %v2358_v19, %v1876_v9 }
 0x9c1   : > { %v1889_v21 = vmul.f32 %v1888_v18, %v1884_v44  ;;  %1899 = sbr.rel (%p2106_p1) target bundleno = 2503 (0x9c7), region = 60 }
 0x9c3   : > { %v1894_v22 = vadd.f32 %v1893_v20, %v1889_v21 }
 0x9c5   : > { %1895 = vst.msk [vmem:[#allocation2] sm:$0xff] %vm469_vm2, %v1894_v22 }
 0x9c6   : > { %1900 = vst.msk [vmem:[%s394_s21] sm:$0xff] %vm469_vm2, %v1894_v22 }
 0x9c7 PF: > { %s2108_s13 = sshll.u32 %s2439_s9, 7  ;;  %s2945_s26 = sld [smem:[#allocation16_spill]] }
 0x9c8   : > { %s1915_s20 = sshll.u32 %s394_s21, 4  ;;  %s2946_s11 = sand.u32 1, %s2427_s28   ;;  %s1916_s20 = int_to_ptr.vmem [resolvable:$true] %s1915_s20 }
 0x9c9   : > { %s1902_s30 = scalar_lea.sflag [#allocation4], %s2946_s11  ;;  %s2359_s27 = scalar_lea.vmem %s1916_s20, 128 }
 0x9ca   : > { %p2360_p2 = scmp.ne.s32.totalorder %s1916_s20, %s2359_s27  ;;  %s2463_s18 = smov [#allocation3]  }
 0x9cb   : > { %s2363_s8 = sshll.u32 %s2463_s18, 4  ;;  %s2364_s8 = int_to_ptr.vmem [resolvable:$false] %s2363_s8 }
 0x9cc   : > { %p2361_p4 = pnand %p2360_p2, %p2558_p3  ;;  %s2365_s10 = scalar_lea.vmem %s2364_s8, 256 }
 0x9cd   : > { %s1913_s25 = scalar_lea.hbm %s2945_s26, %s2108_s13  ;;  %p2366_p6 = scmp.lt.s32.totalorder %s1916_s20, %s2364_s8 }
 0x9ce   : > { %p2362_p5 = pneg %p2361_p4  ;;  %p2367_p7 = scmp.lt.s32.totalorder %s2365_s10, %s2359_s27 }
 0x9d0   : > { %p2368_p8 = por %p2367_p7, %p2366_p6 }
 0x9d2   : > { %p2369_p10 = pnand %p2368_p8, %p2362_p5 }
 0x9d4   : > { %2372 = shalt.err (!%p2369_p10)
}
 0x9d5   : > { %s2373_s9 = scalar_lea.hbm %s1913_s25, 128  ;;  %s2377_s15 = scalar_lea.hbm %s2945_s26, 256 }
 0x9d6   : > { %p2374_p11 = scmp.ne.s32.totalorder %s1913_s25, %s2373_s9  ;;  %p2378_p0 = scmp.lt.s32.totalorder %s1913_s25, %s2945_s26 }
 0x9d7   : > { %p2379_p1 = scmp.lt.s32.totalorder %s2377_s15, %s2373_s9 }
 0x9d8   : > { %p2375_p12 = pnand %p2374_p11, %p2558_p3 }
 0x9d9   : > { %p2380_p2 = por %p2379_p1, %p2378_p0 }
 0x9da   : > { %p2376_p13 = pneg %p2375_p12 }
 0x9dc   : > { %p2381_p4 = pnand %p2380_p2, %p2376_p13 }
 0x9de   : > { %2384 = shalt.err (!%p2381_p4)
}
 0x9df   : > { %2246 = dma.vmem_to_hbm [thread:$0]  (%p2558_p3), %s1916_s20, 128, %s1913_s25, %s1902_s30  }
 0x9e0 PF: > { %s2947_s12 = sld [smem:[#allocation10_spill]] }
 0x9e1   : > { %s2948_s22 = sld [smem:[#allocation6_spill]] }
 0x9e6   : > { %p2252_p5 = scmp.ge.s32.totalorder %s2947_s12, 2 }
 0x9e7   : > { %s1927_s13 = sand.u32 1, %s2948_s22  }
 0x9e8   : > { %p2249_p6 = pnand %p2252_p5, %p2568_p9  ;;  %s1928_s14 = scalar_lea.sflag [#allocation4], %s1927_s13 }
 0x9ea   : > { %p2250_p7 = pneg %p2249_p6 }
 0x9ec   : > { %2418 = dma.done.wait (%p2250_p7), %s1928_s14, 128  }
 0x9ed   : > { %2420 = vsyncadd (%p2250_p7), %s1928_s14, 4294967168  ;;  %s21_s12 = sadd.s32 1, %s2947_s12   ;;  %s2950_s16 = sld [smem:[#allocation7_spill]] }
 0x9ee   : > { %p18_p8 = scmp.ge.s32.totalorder %s21_s12, 6   ;;  %s2951_s29 = sld [smem:[#allocation15_spill]] }
 0x9ef   : > { %s2952_s30 = sld [smem:[#allocation8_spill]]  ;;  %s2956_s27 = smov %s2427_s28 }
 0x9f0   : > { %s2953_s9 = sld [smem:[#allocation9_spill]]  ;;  %20 = sbr.rel (!%p18_p8) target bundleno = 7 (0x7), region = 113 }
 0x9f1   : > { %s2954_s10 = sld [smem:[#allocation11_spill]] }
 0x9f2   : > { %s2955_s11 = sld [smem:[#allocation13_spill]] }
 0x9f3   : > { %s2957_s28 = smov %s2950_s16 }
 0x9f5   :  { %1933 = vsyncpa [#allocation4], 1 }
 0x9f6   :  { %1935 = vsyncpa [#allocation4 + $0x1], 1 }

</bundles_post_ra>
